<compile_context>
chip_gen: v5e
topology: v5e:2x2
jax: 0.10.0
libtpu: 0.0.40
codegen_flags: <defaults>
</compile_context>

<pallas_src>
import functools

import jax
import jax.numpy as jnp
from jax.experimental import pallas as pl
from jax.experimental.pallas import tpu as pltpu

LANES = 128
TM_MAX = 2048  # rows per tile: 2048*128*4B = 1 MiB/tile (f32)


def _nmse_partial_kernel(x_ref, t_ref, num_ref, den_ref, *, block_rows, valid_rows):
    i = pl.program_id(0)
    x = x_ref[...].astype(jnp.float32)
    t = t_ref[...].astype(jnp.float32)

    if valid_rows % block_rows != 0:
        # The last grid step reads a partial block; rows past `valid_rows` hold
        # unspecified data -> select them to zero (select, so NaN/Inf garbage
        # cannot propagate). Statically skipped when tiling divides evenly.
        row = jax.lax.broadcasted_iota(jnp.int32, (block_rows, LANES), 0) + i * block_rows
        keep = row < valid_rows
        x = jnp.where(keep, x, 0.0)
        t = jnp.where(keep, t, 0.0)

    d = t - x
    # (TM,128) -> (8,128): summing the leading axis of (TM//8, 8, 128) is pure
    # vreg-wise VPU adds (no cross-lane XLU work), easily hidden under the DMA.
    num_ref[...] = (d * d).reshape(1, -1, 8, LANES).sum(axis=1)
    den_ref[...] = (t * t).reshape(1, -1, 8, LANES).sum(axis=1)


def nmse_loss(inp, tgt):
    """Normalized MSE: sum((tgt - inp)^2) / sum(tgt^2). Returns a float32 scalar."""
    assert inp.shape == tgt.shape, (inp.shape, tgt.shape)
    n = inp.size
    flat_i = inp.reshape(-1)  # layout-agnostic reduction: flatten is free
    flat_t = tgt.reshape(-1)

    rows = pl.cdiv(n, LANES)
    if rows >= TM_MAX:
        tm = TM_MAX
        rows_padded = rows
    else:
        # Small input (< 1 MiB of f32): round the row count up to a multiple of
        # 8 so the in-kernel (rows//8, 8, 128) slab-sum is well formed; the pad
        # below is tiny in this branch.
        tm = rows_padded = ((rows + 7) // 8) * 8

    pad = rows_padded * LANES - n
    if pad:
        # Only materialized when n is not already lane-aligned; zero padding is
        # exact for both sums. Native dtype is preserved (no f32 upcast copy).
        flat_i = jnp.pad(flat_i, (0, pad))
        flat_t = jnp.pad(flat_t, (0, pad))

    x2 = flat_i.reshape(rows_padded, LANES)
    t2 = flat_t.reshape(rows_padded, LANES)

    grid = pl.cdiv(rows_padded, tm)

    kernel = functools.partial(
        _nmse_partial_kernel, block_rows=tm, valid_rows=rows_padded
    )

    num_parts, den_parts = pl.pallas_call(
        kernel,
        out_shape=(
            jax.ShapeDtypeStruct((grid, 8, LANES), jnp.float32),
            jax.ShapeDtypeStruct((grid, 8, LANES), jnp.float32),
        ),
        grid_spec=pltpu.PrefetchScalarGridSpec(
            num_scalar_prefetch=0,
            grid=(grid,),
            in_specs=[
                pl.BlockSpec((tm, LANES), lambda i: (i, 0)),
                pl.BlockSpec((tm, LANES), lambda i: (i, 0)),
            ],
            out_specs=[
                pl.BlockSpec((1, 8, LANES), lambda i: (i, 0, 0)),
                pl.BlockSpec((1, 8, LANES), lambda i: (i, 0, 0)),
            ],
        ),
        compiler_params=pltpu.CompilerParams(
            # No cross-step carry -> fully parallel; shards across both
            # TensorCores on v7x, harmless serial loop on v5e/v6e.
            dimension_semantics=("parallel",),
        ),
    )(x2, t2)

    num = jnp.sum(num_parts)
    den = jnp.sum(den_parts)
    # No epsilon: matches the PyTorch module (all-zero target -> inf/nan).
    return num / den


if __name__ == "__main__":
    key = jax.random.PRNGKey(0)
    k1, k2, k3, k4 = jax.random.split(key, 4)

    # Small NCHW shapes consistent with an image-regression loss.
    x = jax.random.normal(k1, (2, 4, 16, 16), dtype=jnp.float32)   # prediction
    t = jax.random.normal(k2, (2, 4, 16, 16), dtype=jnp.float32)   # target

    loss = nmse_loss(x, t)
    jax.block_until_ready(loss)
    ref = jnp.sum((t - x) ** 2) / jnp.sum(t ** 2)
    assert jnp.allclose(loss, ref, rtol=1e-4, atol=1e-6), (loss, ref)

    # Second check: exercises the multi-tile + masked-tail path
    # (element count not a multiple of 128, rows not a multiple of TM).
    x2 = jax.random.normal(k3, (2, 3, 300, 150), dtype=jnp.float32)
    t2 = jax.random.normal(k4, (2, 3, 300, 150), dtype=jnp.float32)
    loss2 = nmse_loss(x2, t2)
    jax.block_until_ready(loss2)
    ref2 = jnp.sum((t2 - x2) ** 2) / jnp.sum(t2 ** 2)
    assert jnp.allclose(loss2, ref2, rtol=1e-4, atol=1e-6), (loss2, ref2)

    print("KERNEL_OK")
</pallas_src>

<mosaic_0001>
module attributes {stable_mosaic.version = 11 : i64} {
  func.func @_nmse_partial_kernel(%arg0: i32, %arg1: memref<16x128xf32, #tpu.memory_space<vmem>>, %arg2: memref<16x128xf32, #tpu.memory_space<vmem>>, %arg3: memref<1x8x128xf32, #tpu.memory_space<vmem>>, %arg4: memref<1x8x128xf32, #tpu.memory_space<vmem>>) attributes {dimension_semantics = [#tpu.dimension_semantics<parallel>], iteration_bounds = array<i64: 1>, scalar_prefetch = 0 : i64, scratch_operands = 0 : i64, tpu.core_type = #tpu.core_type<tc>, window_params = [{transform_indices = @transform_0, window_bounds = array<i64: 16, 128>}, {transform_indices = @transform_1, window_bounds = array<i64: 16, 128>}, {transform_indices = @transform_2, window_bounds = array<i64: 1, 8, 128>}, {transform_indices = @transform_3, window_bounds = array<i64: 1, 8, 128>}]} {
    %c0 = arith.constant 0 : index
    %c0_0 = arith.constant 0 : index
    %0 = vector.load %arg1[%c0, %c0_0] : memref<16x128xf32, #tpu.memory_space<vmem>>, vector<16x128xf32>
    %c0_1 = arith.constant 0 : index
    %c0_2 = arith.constant 0 : index
    %1 = vector.load %arg2[%c0_1, %c0_2] : memref<16x128xf32, #tpu.memory_space<vmem>>, vector<16x128xf32>
    %2 = arith.subf %1, %0 : vector<16x128xf32>
    %3 = arith.mulf %2, %2 : vector<16x128xf32>
    %4 = vector.shape_cast %3 : vector<16x128xf32> to vector<1x2x8x128xf32>
    %cst = arith.constant dense<0.000000e+00> : vector<1x8x128xf32>
    %5 = vector.multi_reduction <add>, %4, %cst [1] : vector<1x2x8x128xf32> to vector<1x8x128xf32>
    %c0_3 = arith.constant 0 : index
    %c0_4 = arith.constant 0 : index
    %c0_5 = arith.constant 0 : index
    %6 = vector.load %arg3[%c0_3, %c0_4, %c0_5] : memref<1x8x128xf32, #tpu.memory_space<vmem>>, vector<1x8x128xf32>
    tpu.vector_store %arg3[%c0_3, %c0_4, %c0_5], %5 {strides = array<i32>} : memref<1x8x128xf32, #tpu.memory_space<vmem>>, vector<1x8x128xf32>,
    %7 = arith.mulf %1, %1 : vector<16x128xf32>
    %8 = vector.shape_cast %7 : vector<16x128xf32> to vector<1x2x8x128xf32>
    %cst_6 = arith.constant dense<0.000000e+00> : vector<1x8x128xf32>
    %9 = vector.multi_reduction <add>, %8, %cst_6 [1] : vector<1x2x8x128xf32> to vector<1x8x128xf32>
    %c0_7 = arith.constant 0 : index
    %c0_8 = arith.constant 0 : index
    %c0_9 = arith.constant 0 : index
    %10 = vector.load %arg4[%c0_7, %c0_8, %c0_9] : memref<1x8x128xf32, #tpu.memory_space<vmem>>, vector<1x8x128xf32>
    tpu.vector_store %arg4[%c0_7, %c0_8, %c0_9], %9 {strides = array<i32>} : memref<1x8x128xf32, #tpu.memory_space<vmem>>, vector<1x8x128xf32>,
    return
  }
  func.func @transform_0(%arg0: i32) -> (i32, i32) {
    %c0_i32 = arith.constant 0 : i32
    %c0_i32_0 = arith.constant 0 : i32
    return %arg0, %c0_i32 : i32, i32
  }
  func.func @transform_1(%arg0: i32) -> (i32, i32) {
    %c0_i32 = arith.constant 0 : i32
    %c0_i32_0 = arith.constant 0 : i32
    return %arg0, %c0_i32 : i32, i32
  }
  func.func @transform_2(%arg0: i32) -> (i32, i32, i32) {
    %c0_i32 = arith.constant 0 : i32
    %c0_i32_0 = arith.constant 0 : i32
    %c0_i32_1 = arith.constant 0 : i32
    return %arg0, %c0_i32, %c0_i32_0 : i32, i32, i32
  }
  func.func @transform_3(%arg0: i32) -> (i32, i32, i32) {
    %c0_i32 = arith.constant 0 : i32
    %c0_i32_0 = arith.constant 0 : i32
    %c0_i32_1 = arith.constant 0 : i32
    return %arg0, %c0_i32, %c0_i32_0 : i32, i32, i32
  }
}

</mosaic_0001>

<bundles_post_ra>
// kernel: tpu_custom_call.1
= control target key start
LH: loop header
LB: loop body
LE: loop exit
PB: predicated region body
PF: predicated region fallthrough
CT: control target
= control target key end

     0   :  { %9 = vsyncpa [#allocation3], 0  ;;  %s243_s0 = inlined_call_operand.hbm [shape: f32[16,128], index: 0, kind: input, shape index: {}]   ;;  %s244_s1 = inlined_call_operand.hbm [shape: f32[16,128], index: 1, kind: input, shape index: {}]   ;;  %s245_s2 = inlined_call_operand.hbm [shape: f32[1,8,128], index: 2, kind: output, shape index: {0}]   ;;  %s246_s3 = inlined_call_operand.hbm [shape: f32[1,8,128], index: 3, kind: output, shape index: {1}]  }
   0x1   :  { %10 = vsyncpa [#allocation6], 0 }
   0x2   :  { %11 = vsyncpa [#allocation4], 0 }
   0x3   :  { %12 = vsyncpa [#allocation9], 0  ;;  %s17_s14 = sshll.u32 %s243_s0, 4  ;;  %s205_s15 = smov [#allocation2]   ;;  %s18_s14 = int_to_ptr.hbm [resolvable:$true] %s17_s14 }
   0x4   :  { %s19_s16 = sshll.u32 %s205_s15, 4  ;;  %s30_s19 = sshll.u32 %s244_s1, 4  ;;  %s20_s16 = int_to_ptr.vmem [resolvable:$true] %s19_s16  ;;  %s31_s19 = int_to_ptr.hbm [resolvable:$true] %s30_s19 }
   0x5   :  { %s206_s20 = smov 128   ;;  %s207_s21 = smov 8  }
   0x6   :  { %25 = dma.hbm_to_vmem [thread:$0]  %s18_s14, 256, %s20_s16, [#allocation3], %s206_s20, %s206_s20, %s207_s21  }
   0x7   :  { %s208_s22 = smov [#allocation5]  }
   0x8   :  { %s32_s23 = sshll.u32 %s208_s22, 4  ;;  %s33_s23 = int_to_ptr.vmem [resolvable:$true] %s32_s23 }
   0x9   :  { %38 = dma.hbm_to_vmem [thread:$0]  %s31_s19, 256, %s33_s23, [#allocation6], %s206_s20, %s206_s20, %s207_s21  }
   0xa   :  { %197 = dma.done.wait [#allocation3], 256  }
   0xb   :  { %198 = vsyncadd [#allocation3], 4294967040 }
   0xc   :  { %199 = dma.done.wait [#allocation6], 256  }
   0xd   :  { %200 = vsyncadd [#allocation6], 4294967040  ;;  %v47_v0 = vld [vmem:[#allocation2] sm:$0xff]  ;;  %v48_v1 = vld [vmem:[#allocation2 + $0x8] sm:$0xff]  ;;  %s209_s0 = smov [#allocation8]   ;;  %s79_s26 = sshll.u32 %s246_s3, 4  ;;  %s80_s26 = int_to_ptr.hbm [resolvable:$true] %s79_s26 }
   0xe   :  { %v49_v2 = vld [vmem:[#allocation5] sm:$0xff]  ;;  %v50_v3 = vld [vmem:[#allocation5 + $0x8] sm:$0xff]  ;;  %s77_s1 = sshll.u32 %s209_s0, 4  ;;  %s210_s27 = smov [#allocation7]   ;;  %s78_s1 = int_to_ptr.vmem [resolvable:$true] %s77_s1 }
   0xf   :  { %v51_v4 = vsub.f32 %v49_v2, %v47_v0  ;;  %v57_v5 = vmul.f32 %v49_v2, %v49_v2  ;;  %v52_v6 = vsub.f32 %v50_v3, %v48_v1  ;;  %v58_v7 = vmul.f32 %v50_v3, %v50_v3  ;;  %s66_s28 = sshll.u32 %s210_s27, 4  ;;  %s68_s4 = sshll.u32 %s245_s2, 4  ;;  %s67_s28 = int_to_ptr.vmem [resolvable:$true] %s66_s28  ;;  %s69_s4 = int_to_ptr.hbm [resolvable:$true] %s68_s4 }
  0x11   :  { %v53_v8 = vmul.f32 %v51_v4, %v51_v4  ;;  %v54_v9 = vmul.f32 %v52_v6, %v52_v6  ;;  %v59_v10 = vadd.f32 %v58_v7, %v57_v5 }
  0x13   :  { %v55_v11 = vadd.f32 %v54_v9, %v53_v8  ;;  %60 = vst [vmem:[#allocation8] sm:$0xff] %v59_v10 }
  0x14   :  { %82 = dma.vmem_to_hbm [thread:$0]  %s78_s1, 128, %s80_s26, [#allocation9]  }
  0x15   :  { %56 = vst [vmem:[#allocation7] sm:$0xff] %v55_v11 }
  0x16   :  { %71 = dma.vmem_to_hbm [thread:$0]  %s67_s28, 128, %s69_s4, [#allocation4]  }
  0x17   :  { %201 = dma.done.wait [#allocation4], 128  }
  0x18   :  { %202 = vsyncadd [#allocation4], 4294967168 }
  0x19   :  { %203 = dma.done.wait [#allocation9], 128  }
  0x1a   :  { %204 = vsyncadd [#allocation9], 4294967168 }
  0x1b   :  { %91 = vsyncpa [#allocation3], 1 }
  0x1c   :  { %92 = vsyncpa [#allocation6], 1 }
  0x1d   :  { %93 = vsyncpa [#allocation4], 1 }
  0x1e   :  { %94 = vsyncpa [#allocation9], 1 }

</bundles_post_ra>
